<compile_context>
chip_gen: v7x
topology: tpu7x:2x2x1
jax: 0.10.0
libtpu: 0.0.40
codegen_flags: <defaults>
</compile_context>

<pallas_src>
import math

import jax
import jax.numpy as jnp
from jax.experimental import pallas as pl
from jax.experimental.pallas import tpu as pltpu

_LANE = 128


def _round_up(x, m):
    return ((x + m - 1) // m) * m


def _sublane(nbytes):
    # Native sublane packing: 8 rows for 4-byte, 16 for 2-byte, 32 for 1-byte.
    return 8 * max(1, 4 // max(1, nbytes))


def _default_vmem_budget():
    cap = 128 * 1024 * 1024
    try:
        cap = int(getattr(pltpu.get_tpu_info(), "vmem_capacity_bytes", cap))
    except Exception:
        pass
    # Leave headroom for Mosaic internal scratch / pipeliner metadata:
    # ~24 MiB on 128 MiB parts (v5e/v6e), ~21 MiB on v7x's 64 MiB per-TC VMEM.
    return int(min(24 * 1024 * 1024, cap // 3))


def _tile_vmem_bytes(tm, tn, Kdim, in_bytes, out_bytes):
    """Physical (lane/sublane-padded) VMEM bytes of the pipelined tiles."""
    sub_in, sub_out = _sublane(in_bytes), _sublane(out_bytes)
    k_lane = _round_up(Kdim, _LANE)          # x tile lane dim pads to 128
    k_sub = _round_up(Kdim, sub_in)          # weight slab sublane dim
    tn_lane = _round_up(tn, _LANE)
    x_tile = _round_up(tm, sub_in) * k_lane * in_bytes
    w_slab = k_sub * tn_lane * in_bytes
    b_row = 8 * tn_lane * 4
    o_tile = _round_up(tm, sub_out) * tn_lane * out_bytes
    acc_tmp = _round_up(tm, 8) * tn_lane * 4  # f32 matmul-result temp
    return 2 * (x_tile + w_slab + b_row + o_tile) + acc_tmp


def _choose_tiles(M, d_model, Kdim, in_bytes, out_bytes, vmem_budget):
    # Lane axis: never pad d_model; tile it only when it is a large multiple
    # of 128 (keeps the resident weight slab small for huge d_model).
    if d_model % _LANE == 0 and d_model > 2048:
        tn = 512
    else:
        tn = d_model
    n_tiles_n = pl.cdiv(d_model, tn)

    # tm cap from the corrected (physically padded) VMEM budget model.
    sub_in = _sublane(in_bytes)
    k_lane = _round_up(Kdim, _LANE)
    k_sub = _round_up(Kdim, sub_in)
    tn_lane = _round_up(tn, _LANE)
    fixed = 2 * (k_sub * tn_lane * in_bytes + 8 * tn_lane * 4)
    per_row = 2 * (k_lane * in_bytes + tn_lane * out_bytes) + tn_lane * 4
    tm_cap = (vmem_budget - fixed) // per_row
    tm_cap = int(max(8, min(1024, (tm_cap // 8) * 8)))

    if M <= 8:
        return M, tn  # full-extent row block (M may not be 8-aligned)

    tm = min(tm_cap, (M // 8) * 8)  # largest 8-aligned tile not exceeding M
    if M > 16 and n_tiles_n == 1:
        # v7x dual-TC: guarantee at least 2 grid steps so both TCs get work.
        tm = min(tm, _round_up(pl.cdiv(M, 2), 8))
    return max(8, tm), tn


def _conv1d_matmul_kernel(x_ref, w_ref, b_ref, o_ref):
    # (tm, Kdim) @ (Kdim, tn) on the MXU with f32 accumulation; bias add stays
    # in f32 (VPU fast path on v5e); cast only on the final store.
    acc = jnp.dot(x_ref[...], w_ref[...], preferred_element_type=jnp.float32)
    o_ref[...] = (acc + b_ref[...]).astype(o_ref.dtype)


def conv1d_embedding(x, weight, bias, *, stride, padding,
                     compute_dtype=None, out_dtype=None,
                     vmem_budget_bytes=None):
    """Equivalent of Conv1dEmbedding.forward.

    x:      (B, L, C_in)          -- batch, in_seq_len, in_features
    weight: (d_model, C_in, K)    -- PyTorch nn.Conv1d weight layout
    bias:   (d_model,)
    returns (B, L_out, d_model) in `out_dtype` (default: x.dtype)
    """
    B, L, C_in = x.shape
    d_model, c_in_w, K = weight.shape
    assert c_in_w == C_in
    L_out = (L + 2 * padding - K) // stride + 1

    compute_dtype = jnp.dtype(compute_dtype) if compute_dtype is not None else x.dtype
    out_dtype = jnp.dtype(out_dtype) if out_dtype is not None else x.dtype
    if vmem_budget_bytes is None:
        vmem_budget_bytes = _default_vmem_budget()

    # ---- glue: pad + im2col (pure layout work; allow_input_fusion lets XLA
    # fuse this producer into the Pallas input stream instead of an HBM
    # round-trip of the K-times-duplicated patch matrix). ----
    # TODO(synk): verify in HLO that x_col fuses; if it still materializes,
    # build the patches in-kernel from a (tm*stride + K - 1, C_in) row window.
    x_pad = jnp.pad(x, ((0, 0), (padding, padding), (0, 0)))
    cols = [x_pad[:, k:k + stride * (L_out - 1) + 1:stride, :] for k in range(K)]
    x_col = jnp.stack(cols, axis=2).reshape(B * L_out, K * C_in).astype(compute_dtype)

    # (d_model, C_in, K) -> (K, C_in, d_model) -> (K*C_in, d_model)
    w_flat = jnp.transpose(weight, (2, 1, 0)).reshape(K * C_in, d_model)
    w_flat = w_flat.astype(compute_dtype)
    b_row = bias.astype(jnp.float32).reshape(1, d_model)

    Kdim = K * C_in
    M = B * L_out
    in_bytes = jnp.dtype(compute_dtype).itemsize
    out_bytes = jnp.dtype(out_dtype).itemsize

    tm, tn = _choose_tiles(M, d_model, Kdim, in_bytes, out_bytes, vmem_budget_bytes)
    grid = (pl.cdiv(M, tm), pl.cdiv(d_model, tn))

    # Requested limit = actual (double-buffered, physically padded) tile bytes
    # plus slack; no extra 2x; capped at 40 MiB to keep headroom on v7x.
    tile_bytes = _tile_vmem_bytes(tm, tn, Kdim, in_bytes, out_bytes)
    vmem_limit = int(min(40 * 1024 * 1024,
                         max(tile_bytes + tile_bytes // 4 + (1 << 20),
                             16 * 1024 * 1024)))

    cost = pl.CostEstimate(
        flops=2 * M * Kdim * d_model,
        transcendentals=0,
        bytes_accessed=(M * Kdim * in_bytes + Kdim * d_model * in_bytes
                        + M * d_model * out_bytes + d_model * 4),
    )

    out = pl.pallas_call(
        _conv1d_matmul_kernel,
        out_shape=jax.ShapeDtypeStruct((M, d_model), out_dtype),
        grid_spec=pltpu.PrefetchScalarGridSpec(
            num_scalar_prefetch=0,
            grid=grid,
            in_specs=[
                pl.BlockSpec((tm, Kdim), lambda i, j: (i, 0)),   # patch-row tile
                pl.BlockSpec((Kdim, tn), lambda i, j: (0, j)),   # weight slab
                pl.BlockSpec((1, tn), lambda i, j: (0, j)),      # f32 bias row
            ],
            out_specs=pl.BlockSpec((tm, tn), lambda i, j: (i, j)),
        ),
        compiler_params=pltpu.CompilerParams(
            dimension_semantics=("parallel", "parallel"),
            vmem_limit_bytes=vmem_limit,
            allow_input_fusion=[True, False, False],
        ),
        cost_estimate=cost,
    )(x_col, w_flat, b_row)

    # No padding was introduced, so this reshape is a free view (no HBM copy).
    return out.reshape(B, L_out, d_model)


def _reference(x, weight, bias, stride, padding):
    B, L, C_in = x.shape
    d_model, _, K = weight.shape
    L_out = (L + 2 * padding - K) // stride + 1
    x_pad = jnp.pad(x, ((0, 0), (padding, padding), (0, 0)))
    patches = jnp.stack(
        [x_pad[:, k:k + stride * (L_out - 1) + 1:stride, :] for k in range(K)],
        axis=2)  # (B, L_out, K, C_in)
    return jnp.einsum("btkc,okc->bto", patches,
                      jnp.transpose(weight, (0, 2, 1))) + bias


if __name__ == "__main__":
    # Module hyperparameters (forward: (B, L, in_features) -> (B, L_out, d_model)).
    B, L = 2, 16
    in_features, d_model = 4, 32
    kernel_size, stride, padding = 3, 1, 1

    key = jax.random.PRNGKey(0)
    kx, kw, kb = jax.random.split(key, 3)

    # nn.Conv1d default init: U(-1/sqrt(fan_in), 1/sqrt(fan_in))
    fan_in = in_features * kernel_size
    bound = 1.0 / math.sqrt(fan_in)
    weight = jax.random.uniform(kw, (d_model, in_features, kernel_size),
                                minval=-bound, maxval=bound, dtype=jnp.float32)
    bias = jax.random.uniform(kb, (d_model,),
                              minval=-bound, maxval=bound, dtype=jnp.float32)
    x = jax.random.normal(kx, (B, L, in_features), dtype=jnp.float32)

    ref = _reference(x, weight, bias, stride, padding)

    # f32 path (exact match to the plain-JAX reference).
    y = jax.block_until_ready(
        conv1d_embedding(x, weight, bias, stride=stride, padding=padding))
    assert y.shape == ref.shape
    assert jnp.allclose(y, ref, atol=1e-5, rtol=1e-5)

    # bf16-traffic path (f32 MXU accumulate + f32 bias add) -- ~2x fewer HBM bytes.
    y_bf16 = jax.block_until_ready(
        conv1d_embedding(x, weight, bias, stride=stride, padding=padding,
                         compute_dtype=jnp.bfloat16, out_dtype=jnp.bfloat16))
    assert jnp.allclose(y_bf16.astype(jnp.float32), ref, atol=3e-2, rtol=3e-2)

    # Second config (stride/padding > 1, odd length -> ragged last row tile).
    kernel_size2, stride2, padding2 = 5, 2, 2
    kw2, kb2, kx2 = jax.random.split(jax.random.PRNGKey(1), 3)
    bound2 = 1.0 / math.sqrt(in_features * kernel_size2)
    weight2 = jax.random.uniform(kw2, (d_model, in_features, kernel_size2),
                                 minval=-bound2, maxval=bound2, dtype=jnp.float32)
    bias2 = jax.random.uniform(kb2, (d_model,), minval=-bound2, maxval=bound2,
                               dtype=jnp.float32)
    x2 = jax.random.normal(kx2, (B, 61, in_features), dtype=jnp.float32)
    y2 = jax.block_until_ready(
        conv1d_embedding(x2, weight2, bias2, stride=stride2, padding=padding2))
    ref2 = _reference(x2, weight2, bias2, stride2, padding2)
    assert y2.shape == ref2.shape
    assert jnp.allclose(y2, ref2, atol=1e-5, rtol=1e-5)

    print("KERNEL_OK")
</pallas_src>

<mosaic_0001>
module attributes {stable_mosaic.version = 11 : i64} {
  func.func @_conv1d_matmul_kernel(%arg0: i32, %arg1: i32, %arg2: memref<16x12xf32, #tpu.memory_space<vmem>>, %arg3: memref<12x32xf32, #tpu.memory_space<vmem>>, %arg4: memref<1x32xf32, #tpu.memory_space<vmem>>, %arg5: memref<16x32xf32, #tpu.memory_space<vmem>>) attributes {dimension_semantics = [#tpu.dimension_semantics<parallel>, #tpu.dimension_semantics<parallel>], iteration_bounds = array<i64: 2, 1>, scalar_prefetch = 0 : i64, scratch_operands = 0 : i64, tpu.core_type = #tpu.core_type<tc>, window_params = [{transform_indices = @transform_0, window_bounds = array<i64: 16, 12>}, {transform_indices = @transform_1, window_bounds = array<i64: 12, 32>}, {transform_indices = @transform_2, window_bounds = array<i64: 1, 32>}, {transform_indices = @transform_3, window_bounds = array<i64: 16, 32>}]} {
    %c0 = arith.constant 0 : index
    %c0_0 = arith.constant 0 : index
    %0 = vector.load %arg2[%c0, %c0_0] : memref<16x12xf32, #tpu.memory_space<vmem>>, vector<16x12xf32>
    %c0_1 = arith.constant 0 : index
    %c0_2 = arith.constant 0 : index
    %1 = vector.load %arg3[%c0_1, %c0_2] : memref<12x32xf32, #tpu.memory_space<vmem>>, vector<12x32xf32>
    %cst = arith.constant dense<0.000000e+00> : vector<16x32xf32>
    %2 = tpu.matmul %0, %1, %cst {dimension_numbers = #tpu.dot_dimension_numbers<[1], [0], [0], [1], [0, 0, 1, 1], [], []>} : vector<16x12xf32>, vector<12x32xf32>, vector<16x32xf32> -> vector<16x32xf32>
    %c0_3 = arith.constant 0 : index
    %c0_4 = arith.constant 0 : index
    %3 = vector.load %arg4[%c0_3, %c0_4] : memref<1x32xf32, #tpu.memory_space<vmem>>, vector<1x32xf32>
    %4 = vector.broadcast %3 : vector<1x32xf32> to vector<16x32xf32>
    %5 = arith.addf %2, %4 : vector<16x32xf32>
    %c0_5 = arith.constant 0 : index
    %c0_6 = arith.constant 0 : index
    %6 = vector.load %arg5[%c0_5, %c0_6] : memref<16x32xf32, #tpu.memory_space<vmem>>, vector<16x32xf32>
    tpu.vector_store %arg5[%c0_5, %c0_6], %5 {strides = array<i32>} : memref<16x32xf32, #tpu.memory_space<vmem>>, vector<16x32xf32>,
    return
  }
  func.func @transform_0(%arg0: i32, %arg1: i32) -> (i32, i32) {
    %c0_i32 = arith.constant 0 : i32
    %c0_i32_0 = arith.constant 0 : i32
    return %arg0, %c0_i32 : i32, i32
  }
  func.func @transform_1(%arg0: i32, %arg1: i32) -> (i32, i32) {
    %c0_i32 = arith.constant 0 : i32
    %c0_i32_0 = arith.constant 0 : i32
    return %c0_i32, %arg1 : i32, i32
  }
  func.func @transform_2(%arg0: i32, %arg1: i32) -> (i32, i32) {
    %c0_i32 = arith.constant 0 : i32
    %c0_i32_0 = arith.constant 0 : i32
    return %c0_i32, %arg1 : i32, i32
  }
  func.func @transform_3(%arg0: i32, %arg1: i32) -> (i32, i32) {
    %c0_i32 = arith.constant 0 : i32
    return %arg0, %arg1 : i32, i32
  }
}

</mosaic_0001>

<bundles_post_ra>
// kernel: tpu_custom_call.1
= control target key start
LH: loop header
LB: loop body
LE: loop exit
PB: predicated region body
PF: predicated region fallthrough
CT: control target
= control target key end

     0   :  { %8 = vsyncpa [#allocation3], 0  ;;  %s753_s0 = inlined_call_operand.vmem [shape: f32[32,12], index: 0, kind: input, shape index: {}]   ;;  %s754_s1 = inlined_call_operand.vmem [shape: f32[12,32], index: 1, kind: input, shape index: {}]   ;;  %s755_s2 = inlined_call_operand.vmem [shape: f32[1,32], index: 2, kind: input, shape index: {}]   ;;  %s756_s3 = inlined_call_operand.hbm [shape: f32[32,32], index: 3, kind: output, shape index: {}]  }
   0x1   :  { %10 = vsyncpa [#allocation3 + $0x1], 0  ;;  %s630_s12 = smov 0   ;;  %s632_s13 = smov 0  }
   0x2   :  { %s634_s14 = smov 0   ;;  %s636_s15 = smov 0  }
   0x3   :  { %s638_s16 = smov 0   ;;  %s640_s17 = smov 0  }
   0x4 LB: > { %s431_s18 = sadd.s32 4294967295, %s604_s17   ;;  %s432_s19 = sadd.s32 4294967294, %s604_s17   ;;  %s604_s17 = sphi %s640_s17, %s16_s17   ;;  %s600_s16 = sphi %s638_s16, %s763_s16   ;;  %s596_s15 = sphi %s636_s15, %s762_s15   ;;  %s592_s14 = sphi %s634_s14, %s761_s14   ;;  %s588_s13 = sphi %s632_s13, %s760_s13   ;;  %s584_s12 = sphi %s630_s12, %s759_s12  }
   0x5   : > { %s28_s20 = sadd.s32 1, %s600_s16  ;;  %s115_s21 = sadd.s32 1, %s592_s14 }
   0x6   : > { %p30_p0 = scmp.ge.s32.totalorder %s28_s20, 2  ;;  %p125_p1 = scmp.ne.s32.totalorder %s592_s14, %s588_s13 }
   0x7   : > { %p126_p2 = scmp.eq.s32.totalorder %s431_s18, 1  ;;  %p131_p3 = scmp.ne.s32.totalorder %s588_s13, %s584_s12 }
   0x8   : > { %s765_s20 = smov (%p30_p0, %s28_s20), 0  ;;  %p132_p5 = scmp.eq.s32.totalorder %s432_s19, 1 }
   0x9   : > { %p670_p4 = por %p126_p2, %p125_p1  ;;  %s110_s23 = ssub.s32 %s600_s16, %s765_s20 }
   0xa   : > { %p437_p6 = scmp.ge.s32.totalorder %s604_s17, 1  ;;  %p113_p7 = scmp.eq.s32.totalorder %s110_s23, 0 }
   0xb   : > { %p677_p8 = por %p132_p5, %p131_p3  ;;  %p172_p9 = scmp.lt.s32.totalorder %s604_s17, 3 }
   0xc   : > { %s683_s25 = scalar_select %p113_p7, %s592_s14, %s115_s21  }
   0xd   : > { %p173_p10 = pnand %p437_p6, %p172_p9 }
   0xe   : > { %v219_v0 = vld [vmem:[%s754_s1] sm:$0xff] (!%p173_p10)  ;;  %v220_v1 = vld [vmem:[%s754_s1 + $0x8] sm:$0xf] (!%p173_p10)  ;;  %vm235_vm0 = vcmask (!%p173_p10), 1043456   ;;  %s439_s30 = sshll.u32 (!%p173_p10), %s596_s15, 1  ;;  %vm606_vm1 = vmmov (!%p173_p10), 1  }
   0xf   : > { %176 = sbr.rel (%p173_p10) target bundleno = 257 (0x101), region = 32  ;;  %v462_v2 = vpack.c.bf16 (!%p173_p10), %v220_v1, %v219_v0  ;;  %vm463_vm2 = vmpackc.low (!%p173_p10), %vm235_vm0, %vm606_vm1  ;;  %p204_p11 = scmp.lt.s32.totalorder (!%p173_p10), %s439_s30, 3  ;;  %vm228_vm3 = vcmask (!%p173_p10), 97280   ;;  %v441_v5 = vld [vmem:[%s755_s2] ss:$0 sm:$0xff] (!%p173_p10)  ;;  %vm314_vm4 = vcmask (!%p173_p10), 261120  }
  0x10   : > { %s200_s8 = sand.u32 (!%p173_p10), 1, %s588_s13   ;;  %s450_s21 = sshll.u32 (!%p173_p10), %s596_s15, 8 }
  0x11   : > { %464 = vmatprep.subr.msk.bf16.mxu0 (!%p173_p10), %vm463_vm2, %v462_v2  ;;  %s438_s9 = sshll.u32 (!%p173_p10), %s200_s8, 4  ;;  %s705_s27 = scalar_lea.hbm (!%p173_p10), %s756_s3, %s450_s21 }
  0x12   : > { %467 = vmatpush3.bf16.msk.msra.mxu0 (!%p173_p10), %vm463_vm2, %v462_v2  ;;  %s202_s18 = scalar_lea.vmem (!%p173_p10), [#allocation2], %s438_s9  ;;  %s707_s28 = scalar_lea.sflag (!%p173_p10), [#allocation3], %s200_s8 }
  0x13   : > { %s332_s19 = sshll.u32 (!%p173_p10), %s202_s18, 4  ;;  %s607_s29 = smov (!%p173_p10), [#allocation2]   ;;  %s700_s19 = int_to_ptr.vmem [resolvable:$true] %s332_s19 }
  0x14   : > { %s526_s15 = scalar_lea.vmem (!%p173_p10), %s700_s19, 256 }
  0x15   : > { %p527_p12 = scmp.ne.s32.totalorder (!%p173_p10), %s700_s19, %s526_s15 }
  0x16   : > { %s767_s30 = smov (!%p204_p11, %s439_s30), 3 }
  0x17   : > { %s440_s4 = sshll.u32 %s767_s30, 3  ;;  %p528_p13 = pnand %p527_p12, %p670_p4 }
  0x18   : > { %s207_s7 = scalar_lea.vmem %s753_s0, %s440_s4  ;;  %s530_s30 = sshll.u32 %s607_s29, 4  ;;  %s531_s30 = int_to_ptr.vmem [resolvable:$false] %s530_s30 }
  0x19   : > { %v217_v3 = vld [vmem:[%s207_s7] sm:$0xff]  ;;  %v218_v4 = vld [vmem:[%s207_s7 + $0x8] sm:$0xff]  ;;  %p529_p0 = pneg %p528_p13  ;;  %s532_s4 = scalar_lea.vmem %s531_s30, 512 }
  0x1a   : > { %459 = vmatprep.mubr.msk.f32.mxu0 %vm228_vm3, %v217_v3  ;;  %p533_p1 = scmp.lt.s32.totalorder %s700_s19, %s531_s30  ;;  %p534_p2 = scmp.lt.s32.totalorder %s532_s4, %s526_s15 }
  0x1b   : > { %460 = vmatmul.mubr.msk.f32.vlgmr.msra.gmra.mrb[0].mxu0 %vm228_vm3, %v218_v4 }
  0x1c   : > { %p535_p3 = por %p534_p2, %p533_p1 }
  0x1e   : > { %p536_p5 = pnand %p535_p3, %p529_p0 }
  0xee   : > { %v461_v6 = vpop.f32.mrb[0].mxu0 }
  0xef   : > { %v311_v7 = vadd.f32 %v461_v6, %v441_v5  ;;  %v305_v8 = vpop.f32.mrb[1].mxu0 }
  0xf0   : > { %v306_v9 = vadd.f32 %v441_v5, %v305_v8 }
  0xf1   : > { %316 = vst.msk [vmem:[%s202_s18 + $0x8] sm:$0xff] %vm314_vm4, %v311_v7 }
  0xf2   : > { %315 = vst.msk [vmem:[%s202_s18] sm:$0xff] %vm314_vm4, %v306_v9 }
  0xf3   : > { %539 = shalt.err (!%p536_p5)
}
  0xf4   : > { %s540_s5 = scalar_lea.hbm %s705_s27, 256  ;;  %s544_s8 = scalar_lea.hbm %s756_s3, 512 }
  0xf5   : > { %p541_p6 = scmp.ne.s32.totalorder %s705_s27, %s540_s5  ;;  %p545_p10 = scmp.lt.u32.totalorder %s705_s27, %s756_s3 }
  0xf6   : > { %p546_p11 = scmp.lt.u32.totalorder %s544_s8, %s540_s5  ;;  %p548_p13 = scmp.lt.u32.totalorder %s540_s5, %s705_s27 }
  0xf7   : > { %p542_p7 = pnand %p541_p6, %p670_p4 }
  0xf8   : > { %p547_p12 = por %p546_p11, %p545_p10 }
  0xf9   : > { %p543_p9 = pneg %p542_p7 }
  0xfa   : > { %p549_p0 = por %p548_p13, %p547_p12 }
  0xfc   : > { %p550_p1 = pnand %p549_p0, %p543_p9 }
  0xfe   : > { %553 = shalt.err (!%p550_p1)
}
  0xff   : > { %s608_s11 = smov 128   ;;  %s609_s18 = smov 8  }
 0x100   : > { %468 = dma.vmem_to_hbm [thread:$0]  (%p670_p4), %s700_s19, 256, %s705_s27, %s707_s28, %s608_s11, %s608_s11, %s609_s18  }
 0x101 PF: > { %p474_p2 = scmp.ge.s32.totalorder %s604_s17, 2  ;;  %s347_s21 = sand.u32 1, %s584_s12  }
 0x102   : > { %s348_s23 = scalar_lea.sflag [#allocation3], %s347_s21 }
 0x103   : > { %p471_p3 = pnand %p474_p2, %p677_p8 }
 0x105   : > { %579 = dma.done.wait (!%p471_p3), %s348_s23, 256  }
 0x106   : > { %581 = vsyncadd (!%p471_p3), %s348_s23, 4294967040  ;;  %s16_s17 = sadd.s32 1, %s604_s17   ;;  %s759_s12 = smov %s588_s13 }
 0x107   : > { %p13_p5 = scmp.ge.s32.totalorder %s16_s17, 4   ;;  %s760_s13 = smov %s592_s14 }
 0x108   : > { %s761_s14 = smov %s683_s25  ;;  %s762_s15 = smov %s600_s16 }
 0x109   : > { %s763_s16 = smov %s765_s20  ;;  %15 = sbr.rel (!%p13_p5) target bundleno = 4 (0x4), region = 73 }
 0x110   :  { %353 = vsyncpa [#allocation3], 1 }
 0x111   :  { %355 = vsyncpa [#allocation3 + $0x1], 1 }

</bundles_post_ra>
